<compile_context>
chip_gen: v7x
topology: tpu7x:2x2x1
jax: 0.10.0
libtpu: 0.0.40
codegen_flags: <defaults>
</compile_context>

<pallas_src>
import jax
import jax.numpy as jnp
from jax.experimental import pallas as pl
from jax.experimental.pallas import tpu as pltpu

EPS = 1e-5
MOMENTUM = 0.9


def _round_up(a, b):
    return ((a + b - 1) // b) * b


def _choose_hw_tile(hw, target):
    """Largest multiple of 128 <= min(target, round_up(hw, 128)) that minimizes
    zero padding of hw (exact divisors preferred; ties go to the larger tile)."""
    cap = max(128, (min(target, _round_up(hw, 128)) // 128) * 128)
    best_t, best_pad = cap, None
    t = cap
    while t >= 128:
        pad = (-hw) % t
        if best_pad is None or pad < best_pad:
            best_t, best_pad = t, pad
            if pad == 0:
                break
        t -= 128
    return best_t


def _choose_row_tile(nc, target, sublane):
    nc_su = _round_up(nc, sublane)
    tr = min(target, nc_su)
    tr = max(sublane, (tr // sublane) * sublane)
    # Megacore (v7x): give pass 1 (whose only "parallel" axis is rows) at
    # least two row programs whenever the row count allows it.
    if nc_su >= 2 * sublane and tr > nc_su // 2:
        tr = max(sublane, ((nc_su // 2) // sublane) * sublane)
    nc_pad = _round_up(nc_su, tr)
    return tr, nc_pad


def _vmem_limit(bytes_needed):
    # Generous headroom, floor at 32 MiB, ceiling 48 MiB (< v7x 64 MiB physical).
    return int(min(max(2 * bytes_needed, 32 << 20), 48 << 20))


# ---------------------------------------------------------------------------
# Pass 1: per-row (= per (n, c)) partial sum and sum-of-squares, tiled over HW.
# Accumulators are lane-dense (tr, 128) resident output blocks; the x tile is
# folded into them with lane-aligned static slices (VPU adds only).
# ---------------------------------------------------------------------------
def _stats_kernel(x_ref, sum_ref, ssq_ref):
    h = pl.program_id(1)

    @pl.when(h == 0)
    def _():
        sum_ref[...] = jnp.zeros_like(sum_ref)
        ssq_ref[...] = jnp.zeros_like(ssq_ref)

    x = x_ref[...].astype(jnp.float32)            # (tr, thw1), thw1 % 128 == 0
    s = sum_ref[...]
    q = ssq_ref[...]
    for k in range(x.shape[-1] // 128):
        xk = x[:, k * 128:(k + 1) * 128]          # lane-aligned vreg column
        s = s + xk
        q = q + xk * xk
    sum_ref[...] = s
    ssq_ref[...] = q


# ---------------------------------------------------------------------------
# Pass 2: out = x * scale + shift  (scale/shift per row, broadcast over HW).
# ---------------------------------------------------------------------------
def _apply_kernel(x_ref, scale_ref, shift_ref, o_ref):
    x = x_ref[...].astype(jnp.float32)
    o_ref[...] = (x * scale_ref[...] + shift_ref[...]).astype(o_ref.dtype)


def switchnorm2d(x, weight, bias, mean_weight, var_weight,
                 running_mean, running_var,
                 *, row_tile_target=256, hw_tile_target=2048):
    """Training-mode SwitchNorm2d forward. x is NCHW. Returns (out, new_rm, new_rv)."""
    N, C, H, W = x.shape
    HW = H * W
    NC = N * C
    esize = jnp.dtype(x.dtype).itemsize
    sublane = {4: 8, 2: 16, 1: 32}.get(esize, 8)

    tr, NC_pad = _choose_row_tile(NC, row_tile_target, sublane)
    thw2 = _choose_hw_tile(HW, hw_tile_target)
    HW_pad = _round_up(HW, thw2)
    # Pass 1 streams only one array, so it can take a 2x HW tile for free
    # (same VMEM cost as pass 2's x+out) whenever it needs no extra padding.
    if HW_pad >= 2 * thw2 and HW_pad % (2 * thw2) == 0:
        thw1 = 2 * thw2
    else:
        thw1 = thw2

    x2 = x.reshape(NC, HW)
    if NC_pad != NC or HW_pad != HW:
        x2 = jnp.pad(x2, ((0, NC_pad - NC), (0, HW_pad - HW)))

    grid1 = (NC_pad // tr, HW_pad // thw1)
    grid2 = (NC_pad // tr, HW_pad // thw2)

    # VMEM budgets (double-buffered blocks) for explicit scoped limits.
    need1 = 2 * tr * thw1 * esize + 2 * 2 * tr * 128 * 4 + (1 << 20)
    need2 = 2 * tr * thw2 * esize + 2 * tr * thw2 * esize + (1 << 20)

    # ---- pass 1: tiled partial sum / sum-of-squares over HW ----------------
    sum_part, ssq_part = pl.pallas_call(
        _stats_kernel,
        out_shape=(
            jax.ShapeDtypeStruct((NC_pad, 128), jnp.float32),
            jax.ShapeDtypeStruct((NC_pad, 128), jnp.float32),
        ),
        grid=grid1,
        in_specs=[pl.BlockSpec((tr, thw1), lambda r, h: (r, h))],
        out_specs=(
            pl.BlockSpec((tr, 128), lambda r, h: (r, 0)),
            pl.BlockSpec((tr, 128), lambda r, h: (r, 0)),
        ),
        compiler_params=pltpu.CompilerParams(
            dimension_semantics=("parallel", "arbitrary"),
            vmem_limit_bytes=_vmem_limit(need1)),
    )(x2)

    # Final cross-lane reduce of the lane-dense partials (tiny, plain JAX).
    sum_x = jnp.sum(sum_part[:NC], axis=-1)
    sum_xx = jnp.sum(ssq_part[:NC], axis=-1)

    # ---- tiny IN / LN / BN mixing on (N, C, 1) stats: plain-JAX glue --------
    mean_in = (sum_x / HW).reshape(N, C, 1)
    ex2 = (sum_xx / HW).reshape(N, C, 1)
    var_in_biased = ex2 - mean_in * mean_in
    # torch.Tensor.var default is the unbiased estimator (divide by HW - 1).
    # HW == 1 is degenerate (torch yields nan there); guard the denominator.
    var_in = var_in_biased * (HW / max(HW - 1, 1))

    mean_ln = mean_in.mean(1, keepdims=True)                     # (N, 1, 1)
    temp = var_in + mean_in * mean_in
    var_ln = temp.mean(1, keepdims=True) - mean_ln * mean_ln
    mean_bn = mean_in.mean(0, keepdims=True)                     # (1, C, 1)
    var_bn = temp.mean(0, keepdims=True) - mean_bn * mean_bn

    mw = jax.nn.softmax(mean_weight.astype(jnp.float32))
    vw = jax.nn.softmax(var_weight.astype(jnp.float32))
    mean = mw[0] * mean_in + mw[1] * mean_ln + mw[2] * mean_bn   # (N, C, 1)
    var = vw[0] * var_in + vw[1] * var_ln + vw[2] * var_bn       # (N, C, 1)

    gamma = weight.reshape(1, C, 1).astype(jnp.float32)
    beta = bias.reshape(1, C, 1).astype(jnp.float32)

    # Guard E[x^2]-mean^2 cancellation (can go ~-1e-7 for near-constant input),
    # then fold the normalization + affine into per-(n,c) scale/shift.
    inv_std = jax.lax.rsqrt(jnp.maximum(var, 0.0) + EPS)
    scale = (gamma * inv_std).reshape(NC, 1)
    shift = (beta - mean * gamma * inv_std).reshape(NC, 1)
    if NC_pad != NC:
        scale = jnp.pad(scale, ((0, NC_pad - NC), (0, 0)))
        shift = jnp.pad(shift, ((0, NC_pad - NC), (0, 0)))

    # ---- pass 2: tiled, fully parallel normalize + affine ------------------
    # (input_output_aliases={0: 0} could drop the extra NC*HW allocation when
    #  the caller donates x; omitted to keep x usable by the caller.)
    out2 = pl.pallas_call(
        _apply_kernel,
        out_shape=jax.ShapeDtypeStruct((NC_pad, HW_pad), x.dtype),
        grid=grid2,
        in_specs=[
            pl.BlockSpec((tr, thw2), lambda r, h: (r, h)),
            pl.BlockSpec((tr, 1), lambda r, h: (r, 0)),
            pl.BlockSpec((tr, 1), lambda r, h: (r, 0)),
        ],
        out_specs=pl.BlockSpec((tr, thw2), lambda r, h: (r, h)),
        compiler_params=pltpu.CompilerParams(
            dimension_semantics=("parallel", "parallel"),
            vmem_limit_bytes=_vmem_limit(need2)),
    )(x2, scale, shift)

    out = out2[:NC, :HW].reshape(N, C, H, W)

    # Running-stat buffer updates (training, using_moving_average=True).
    new_running_mean = MOMENTUM * running_mean + (1.0 - MOMENTUM) * mean_bn
    new_running_var = MOMENTUM * running_var + (1.0 - MOMENTUM) * var_bn

    return out, new_running_mean, new_running_var


def switchnorm2d_reference(x, weight, bias, mean_weight, var_weight):
    """Pure-JAX replica of the PyTorch training-mode forward (for checking)."""
    N, C, H, W = x.shape
    x3 = x.reshape(N, C, -1).astype(jnp.float32)
    mean_in = x3.mean(-1, keepdims=True)
    var_in = x3.var(-1, ddof=1, keepdims=True)
    mean_ln = mean_in.mean(1, keepdims=True)
    temp = var_in + mean_in ** 2
    var_ln = temp.mean(1, keepdims=True) - mean_ln ** 2
    mean_bn = mean_in.mean(0, keepdims=True)
    var_bn = temp.mean(0, keepdims=True) - mean_bn ** 2
    mw = jax.nn.softmax(mean_weight)
    vw = jax.nn.softmax(var_weight)
    mean = mw[0] * mean_in + mw[1] * mean_ln + mw[2] * mean_bn
    var = vw[0] * var_in + vw[1] * var_ln + vw[2] * var_bn
    xh = (x3 - mean) / jnp.sqrt(var + EPS)
    xh = xh.reshape(N, C, H, W)
    return xh * weight + bias


if __name__ == "__main__":
    key = jax.random.PRNGKey(0)
    N, C, H, W = 2, 4, 16, 16

    x = jax.random.normal(key, (N, C, H, W), dtype=jnp.float32)

    # Module init is weight=1, bias=0, mean_weight=var_weight=ones; perturb
    # gamma/beta deterministically so the affine path is exercised.
    weight = (1.0 + 0.1 * jnp.arange(C, dtype=jnp.float32)).reshape(1, C, 1, 1)
    bias = (0.05 * jnp.arange(C, dtype=jnp.float32)).reshape(1, C, 1, 1)
    mean_weight = jnp.ones((3,), dtype=jnp.float32)
    var_weight = jnp.ones((3,), dtype=jnp.float32)
    running_mean = jnp.zeros((1, C, 1), dtype=jnp.float32)
    running_var = jnp.zeros((1, C, 1), dtype=jnp.float32)

    out, new_rm, new_rv = switchnorm2d(
        x, weight, bias, mean_weight, var_weight, running_mean, running_var)
    jax.block_until_ready(out)
    jax.block_until_ready(new_rm)
    jax.block_until_ready(new_rv)

    ref = switchnorm2d_reference(x, weight, bias, mean_weight, var_weight)
    assert out.shape == (N, C, H, W)
    assert jnp.allclose(out, ref, rtol=1e-4, atol=1e-4), "mismatch vs reference"
    assert new_rm.shape == (1, C, 1) and new_rv.shape == (1, C, 1)

    print("KERNEL_OK")
</pallas_src>

<mosaic_0001>
module attributes {stable_mosaic.version = 11 : i64} {
  func.func @_stats_kernel(%arg0: i32, %arg1: i32, %arg2: memref<8x256xf32, #tpu.memory_space<vmem>>, %arg3: memref<8x128xf32, #tpu.memory_space<vmem>>, %arg4: memref<8x128xf32, #tpu.memory_space<vmem>>) attributes {dimension_semantics = [#tpu.dimension_semantics<parallel>, #tpu.dimension_semantics<arbitrary>], iteration_bounds = array<i64: 1, 1>, scalar_prefetch = 0 : i64, scratch_operands = 0 : i64, tpu.core_type = #tpu.core_type<tc>, window_params = [{transform_indices = @transform_0, window_bounds = array<i64: 8, 256>}, {transform_indices = @transform_1, window_bounds = array<i64: 8, 128>}, {transform_indices = @transform_2, window_bounds = array<i64: 8, 128>}]} {
    %c0_i32 = arith.constant 0 : i32
    %0 = arith.cmpi eq, %arg1, %c0_i32 : i32
    %1 = arith.extui %0 : i1 to i32
    %c0_i32_0 = arith.constant 0 : i32
    %2 = arith.cmpi ne, %1, %c0_i32_0 : i32
    scf.if %2 {
      %cst = arith.constant 0.000000e+00 : f32
      %16 = vector.broadcast %cst : f32 to vector<8x128xf32>
      %c0_10 = arith.constant 0 : index
      %c0_11 = arith.constant 0 : index
      %17 = vector.load %arg3[%c0_10, %c0_11] : memref<8x128xf32, #tpu.memory_space<vmem>>, vector<8x128xf32>
      tpu.vector_store %arg3[%c0_10, %c0_11], %16 {strides = array<i32>} : memref<8x128xf32, #tpu.memory_space<vmem>>, vector<8x128xf32>,
      %cst_12 = arith.constant 0.000000e+00 : f32
      %18 = vector.broadcast %cst_12 : f32 to vector<8x128xf32>
      %c0_13 = arith.constant 0 : index
      %c0_14 = arith.constant 0 : index
      %19 = vector.load %arg4[%c0_13, %c0_14] : memref<8x128xf32, #tpu.memory_space<vmem>>, vector<8x128xf32>
      tpu.vector_store %arg4[%c0_13, %c0_14], %18 {strides = array<i32>} : memref<8x128xf32, #tpu.memory_space<vmem>>, vector<8x128xf32>,
    } else {
    }
    %c0 = arith.constant 0 : index
    %c0_1 = arith.constant 0 : index
    %3 = vector.load %arg2[%c0, %c0_1] : memref<8x256xf32, #tpu.memory_space<vmem>>, vector<8x256xf32>
    %c0_2 = arith.constant 0 : index
    %c0_3 = arith.constant 0 : index
    %4 = vector.load %arg3[%c0_2, %c0_3] : memref<8x128xf32, #tpu.memory_space<vmem>>, vector<8x128xf32>
    %c0_4 = arith.constant 0 : index
    %c0_5 = arith.constant 0 : index
    %5 = vector.load %arg4[%c0_4, %c0_5] : memref<8x128xf32, #tpu.memory_space<vmem>>, vector<8x128xf32>
    %6 = vector.extract_strided_slice %3 {offsets = [0, 0], sizes = [8, 128], strides = [1, 1]} : vector<8x256xf32> to vector<8x128xf32>
    %7 = arith.addf %4, %6 : vector<8x128xf32>
    %8 = arith.mulf %6, %6 : vector<8x128xf32>
    %9 = arith.addf %5, %8 : vector<8x128xf32>
    %10 = vector.extract_strided_slice %3 {offsets = [0, 128], sizes = [8, 128], strides = [1, 1]} : vector<8x256xf32> to vector<8x128xf32>
    %11 = arith.addf %7, %10 : vector<8x128xf32>
    %12 = arith.mulf %10, %10 : vector<8x128xf32>
    %13 = arith.addf %9, %12 : vector<8x128xf32>
    %c0_6 = arith.constant 0 : index
    %c0_7 = arith.constant 0 : index
    %14 = vector.load %arg3[%c0_6, %c0_7] : memref<8x128xf32, #tpu.memory_space<vmem>>, vector<8x128xf32>
    tpu.vector_store %arg3[%c0_6, %c0_7], %11 {strides = array<i32>} : memref<8x128xf32, #tpu.memory_space<vmem>>, vector<8x128xf32>,
    %c0_8 = arith.constant 0 : index
    %c0_9 = arith.constant 0 : index
    %15 = vector.load %arg4[%c0_8, %c0_9] : memref<8x128xf32, #tpu.memory_space<vmem>>, vector<8x128xf32>
    tpu.vector_store %arg4[%c0_8, %c0_9], %13 {strides = array<i32>} : memref<8x128xf32, #tpu.memory_space<vmem>>, vector<8x128xf32>,
    return
  }
  func.func @transform_0(%arg0: i32, %arg1: i32) -> (i32, i32) {
    %c0_i32 = arith.constant 0 : i32
    return %arg0, %arg1 : i32, i32
  }
  func.func @transform_1(%arg0: i32, %arg1: i32) -> (i32, i32) {
    %c0_i32 = arith.constant 0 : i32
    %c0_i32_0 = arith.constant 0 : i32
    return %arg0, %c0_i32 : i32, i32
  }
  func.func @transform_2(%arg0: i32, %arg1: i32) -> (i32, i32) {
    %c0_i32 = arith.constant 0 : i32
    %c0_i32_0 = arith.constant 0 : i32
    return %arg0, %c0_i32 : i32, i32
  }
}

</mosaic_0001>

<bundles_post_ra>
// kernel: tpu_custom_call.1
= control target key start
LH: loop header
LB: loop body
LE: loop exit
PB: predicated region body
PF: predicated region fallthrough
CT: control target
= control target key end

     0   :  { %8 = vsyncpa [#allocation3], 0  ;;  %s201_s0 = inlined_call_operand.hbm [shape: f32[8,256], index: 0, kind: input, shape index: {}]   ;;  %s202_s1 = inlined_call_operand.hbm [shape: f32[8,128], index: 1, kind: output, shape index: {0}]   ;;  %s203_s2 = inlined_call_operand.hbm [shape: f32[8,128], index: 2, kind: output, shape index: {1}]  }
   0x1   :  { %9 = vsyncpa [#allocation4], 0 }
   0x2   :  { %10 = vsyncpa [#allocation7], 0  ;;  %s147_s9 = smov [#allocation2]   ;;  %s75_s13 = scalar_lea.hbm %s201_s0, 256 }
   0x3   :  { %s17_s10 = sshll.u32 %s147_s9, 4  ;;  %p76_p0 = scmp.ne.s32.totalorder %s201_s0, %s75_s13  ;;  %s18_s10 = int_to_ptr.vmem [resolvable:$true] %s17_s10 }
   0x4   :  { %p79_p1 = scmp.lt.u32.totalorder %s75_s13, %s201_s0 }
   0x6   :  { %p81_p2 = pnand %p79_p1, %p76_p0 }
   0x8   :  { %84 = shalt.err (!%p81_p2)
}
   0x9   :  { %s85_s18 = scalar_lea.vmem %s18_s10, 256  ;;  %p90_p4 = scmp.lt.s32.totalorder %s18_s10, %s18_s10 }
   0xa   :  { %p86_p3 = scmp.ne.s32.totalorder %s18_s10, %s85_s18  ;;  %p91_p5 = scmp.lt.s32.totalorder %s85_s18, %s85_s18 }
   0xc   :  { %p92_p6 = por %p91_p5, %p90_p4 }
   0xe   :  { %p93_p7 = pnand %p92_p6, %p86_p3 }
  0x10   :  { %96 = shalt.err (!%p93_p7)
}
  0x11   :  { %20 = dma.hbm_to_vmem [thread:$0]  %s201_s0, 256, %s18_s10, [#allocation3]  }
  0x12   :  { %141 = dma.done.wait [#allocation3], 256  }
  0x13   :  { %142 = vsyncadd [#allocation3], 4294967040  ;;  %v30_v0 = vld [vmem:[#allocation2] sm:$0xff]  ;;  %v31_v1 = vld [vmem:[#allocation2 + $0x8] sm:$0xff]  ;;  %s148_s21 = smov [#allocation5]   ;;  %s149_s23 = smov [#allocation6]  }
  0x14   :  { %s48_s22 = sshll.u32 %s148_s21, 4  ;;  %v35_v2 = vmul.f32 %v30_v0, %v30_v0  ;;  %v38_v3 = vmul.f32 %v31_v1, %v31_v1  ;;  %s58_s24 = sshll.u32 %s149_s23, 4  ;;  %v37_v4 = vadd.f32 %v31_v1, %v30_v0  ;;  %s49_s22 = int_to_ptr.vmem [resolvable:$true] %s48_s22  ;;  %s59_s24 = int_to_ptr.vmem [resolvable:$true] %s58_s24 }
  0x15   :  { %s97_s25 = scalar_lea.vmem %s49_s22, 128  ;;  %p102_p9 = scmp.lt.s32.totalorder %s49_s22, %s49_s22 }
  0x16   :  { %40 = vst [vmem:[#allocation5] sm:$0xff] %v37_v4  ;;  %v39_v5 = vadd.f32 %v38_v3, %v35_v2  ;;  %p98_p8 = scmp.ne.s32.totalorder %s49_s22, %s97_s25  ;;  %p103_p10 = scmp.lt.s32.totalorder %s97_s25, %s97_s25 }
  0x18   :  { %p104_p11 = por %p103_p10, %p102_p9 }
  0x1a   :  { %p105_p12 = pnand %p104_p11, %p98_p8 }
  0x1c   :  { %108 = shalt.err (!%p105_p12)
}
  0x1d   :  { %s109_s27 = scalar_lea.hbm %s202_s1, 128 }
  0x1e   :  { %p110_p13 = scmp.ne.s32.totalorder %s202_s1, %s109_s27  ;;  %p113_p0 = scmp.lt.u32.totalorder %s109_s27, %s202_s1 }
  0x20   :  { %p115_p1 = pnand %p113_p0, %p110_p13 }
  0x22   :  { %118 = shalt.err (!%p115_p1)
}
  0x23   :  { %51 = dma.vmem_to_hbm [thread:$0]  %s49_s22, 128, %s202_s1, [#allocation4]   ;;  %41 = vst [vmem:[#allocation6] sm:$0xff] %v39_v5 }
  0x24   :  { %s119_s6 = scalar_lea.vmem %s59_s24, 128  ;;  %p124_p3 = scmp.lt.s32.totalorder %s59_s24, %s59_s24 }
  0x25   :  { %p120_p2 = scmp.ne.s32.totalorder %s59_s24, %s119_s6  ;;  %p125_p4 = scmp.lt.s32.totalorder %s119_s6, %s119_s6 }
  0x27   :  { %p126_p5 = por %p125_p4, %p124_p3 }
  0x29   :  { %p127_p6 = pnand %p126_p5, %p120_p2 }
  0x2b   :  { %130 = shalt.err (!%p127_p6)
}
  0x2c   :  { %s131_s9 = scalar_lea.hbm %s203_s2, 128 }
  0x2d   :  { %p132_p7 = scmp.ne.s32.totalorder %s203_s2, %s131_s9  ;;  %p135_p8 = scmp.lt.u32.totalorder %s131_s9, %s203_s2 }
  0x2f   :  { %p137_p9 = pnand %p135_p8, %p132_p7 }
  0x31   :  { %140 = shalt.err (!%p137_p9)
}
  0x32   :  { %61 = dma.vmem_to_hbm [thread:$0]  %s59_s24, 128, %s203_s2, [#allocation7]  }
  0x33   :  { %143 = dma.done.wait [#allocation4], 128  }
  0x34   :  { %144 = vsyncadd [#allocation4], 4294967168 }
  0x35   :  { %145 = dma.done.wait [#allocation7], 128  }
  0x36   :  { %146 = vsyncadd [#allocation7], 4294967168 }
  0x37   :  { %68 = vsyncpa [#allocation3], 1 }
  0x38   :  { %69 = vsyncpa [#allocation4], 1 }
  0x39   :  { %70 = vsyncpa [#allocation7], 1 }

</bundles_post_ra>
